<compile_context>
chip_gen: v7x
topology: tpu7x:2x2x1
jax: 0.10.0
libtpu: 0.0.40
codegen_flags: <defaults>
</compile_context>

<pallas_src>
import functools
import math

import jax
import jax.numpy as jnp
from jax import lax
from jax.experimental import pallas as pl
from jax.experimental.pallas import tpu as pltpu

LANE = 128


def _round_up(x, m):
    return ((x + m - 1) // m) * m


def _wide_mxu():
    """True on chips with a 256-wide MXU (v6e / v7x); False on v5e and older."""
    try:
        kind = jax.devices()[0].device_kind.lower()
    except Exception:  # pragma: no cover
        return False
    return not any(t in kind for t in ("v2", "v3", "v4", "v5"))


def _choose_rows(m, bytes_per_row, target_bytes=4 << 20, max_rows=4096):
    """Rows per pass-2 block: multiple of 8, ~target_bytes, divisor of m if possible."""
    t = max(8, min(max_rows, (target_bytes // max(bytes_per_row, 1)) // 8 * 8))
    if m <= t:
        return m
    best = 0
    for c in range(8, t + 1, 8):
        if m % c == 0:
            best = c
    if best >= 256:
        return best
    # No convenient divisor: use the byte-budget tile; the remainder block is
    # handled by pl.cdiv (padded reads, dropped out-of-bounds writes).
    return t


def _vmem_limit(double_buffered_bytes, resident_bytes=0, slack=4 << 20):
    need = 2 * double_buffered_bytes + resident_bytes + slack
    # TODO(synk): on v7x (64 MiB VMEM/TC) very large layers additionally want
    # row-strip spatial tiling with a (k-1)-row halo; whole-image blocks are
    # fine for CRNN-sized feature maps.
    return int(min(max(need, 16 << 20), 96 << 20))


# --------------------------------------------------------------------------- #
# Pass 1: conv as K*K accumulated GEMMs (local f32 acc) + per-channel BN sums  #
# --------------------------------------------------------------------------- #
def _conv_stats_kernel(x_ref, w_ref, y_ref, sum_ref, sq_ref, *, ksize, h, w):
    """One (batch image, cout block) grid step.

    x_ref  : (1, h+2p, w+2p, Cin_eff)   bf16  input tile (index map ignores j,
                                              so it stays resident across the
                                              cout-block axis)
    w_ref  : (n_cb, K*K, Cin_eff, TCout) bf16 full weight, resident over the grid
    y_ref  : (h*w, TCout)               bf16  conv output tile (pre-BN)
    sum_ref: (1, 1, TCout)              f32   per-(image, block) channel sum
    sq_ref : (1, 1, TCout)              f32   per-(image, block) sum of squares
    """
    j = pl.program_id(1)
    cin_eff = x_ref.shape[-1]
    acc = None
    for dy in range(ksize):                 # static loop, fully unrolled
        for dx in range(ksize):
            xs = x_ref[0, dy:dy + h, dx:dx + w, :].reshape(h * w, cin_eff)
            wt = w_ref[j, dy * ksize + dx]
            part = jnp.dot(xs, wt, preferred_element_type=jnp.float32)
            acc = part if acc is None else acc + part
    # Single store of the conv tile; stats from the f32 accumulator (pre-downcast).
    y_ref[...] = acc.astype(y_ref.dtype)
    sum_ref[0] = jnp.sum(acc, axis=0, keepdims=True)
    sq_ref[0] = jnp.sum(acc * acc, axis=0, keepdims=True)


# --------------------------------------------------------------------------- #
# Pass 2: folded BN affine + ReLU (fully parallel, full-width lane-dense blocks)#
# --------------------------------------------------------------------------- #
def _bn_apply_kernel(y_ref, scale_ref, shift_ref, o_ref, *, apply_relu):
    out = y_ref[...].astype(jnp.float32) * scale_ref[...] + shift_ref[...]
    if apply_relu:
        out = jnp.maximum(out, 0.0)
    o_ref[...] = out.astype(o_ref.dtype)


# --------------------------------------------------------------------------- #
# Wrapper (NHWC-native core + thin NCHW adapter matching the PyTorch module)   #
# --------------------------------------------------------------------------- #
def conv_bn_layer_nhwc(x_nhwc, weight_oihw, gamma, beta, *, kernel_size=3,
                       stride=1, groups=1, is_vd_mode=False, act="relu",
                       eps=1e-5):
    # TODO(synk): only the stride=1 / groups=1 / non-vd-mode ConvBNLayer variant
    # is implemented (the (2,1)-strided downsample convs and the vd-mode
    # avg-pool shortcut of the full ResNet are not covered here).
    assert stride in (1, (1, 1)) and groups == 1 and not is_vd_mode

    n, h, w, cin = x_nhwc.shape
    cout, _, kh, kw = weight_oihw.shape
    assert kh == kw == kernel_size
    k = kernel_size
    pad = (k - 1) // 2

    cout_p = _round_up(cout, LANE)
    tcout = 256 if (cout_p % 256 == 0 and _wide_mxu()) else LANE
    tcout = min(tcout, cout_p)
    n_cb = cout_p // tcout
    m = n * h * w

    w_kkio = jnp.transpose(weight_oihw, (2, 3, 1, 0)).astype(jnp.float32)

    if k * k * cin <= LANE:
        # ---- small-Cin (stem) path: fold the K*K taps into the contraction ---
        # One lane-dense GEMM of width round_up(K*K*Cin,128) instead of K*K
        # GEMMs each padded Cin->128 (~K*K less MXU work, no per-tap slices);
        # the packed operand is no larger than a 128-channel-padded input.
        # TODO(synk): build this packed operand in VMEM inside the kernel (or
        # keep activations pre-packed across layers) to also cut the input DMA.
        kkcin = k * k * cin
        cin_eff = _round_up(kkcin, LANE)
        xp = jnp.pad(x_nhwc, ((0, 0), (pad, pad), (pad, pad), (0, 0)))
        cols = [xp[:, dy:dy + h, dx:dx + w, :]
                for dy in range(k) for dx in range(k)]
        x_in = jnp.concatenate(cols, axis=-1)
        x_in = jnp.pad(x_in, ((0, 0), (0, 0), (0, 0), (0, cin_eff - kkcin)))
        x_in = x_in.astype(jnp.bfloat16)
        w2d = jnp.pad(w_kkio.reshape(kkcin, cout),
                      ((0, cin_eff - kkcin), (0, cout_p - cout)))
        w_res = w2d.reshape(cin_eff, n_cb, tcout).transpose(1, 0, 2)
        w_res = w_res.reshape(n_cb, 1, cin_eff, tcout).astype(jnp.bfloat16)
        k_eff, hp, wp = 1, h, w
    else:
        # ---- general path: K*K accumulated GEMMs over shifted windows --------
        # TODO(synk): a full ResNet should keep activations bf16 NHWC
        # channel-padded end-to-end so this pad+cast HBM round trip disappears.
        cin_eff = _round_up(cin, LANE)
        x_in = jnp.pad(x_nhwc, ((0, 0), (pad, pad), (pad, pad),
                                (0, cin_eff - cin))).astype(jnp.bfloat16)
        w4 = jnp.pad(w_kkio, ((0, 0), (0, 0), (0, cin_eff - cin),
                              (0, cout_p - cout)))
        w_res = (w4.reshape(k * k, cin_eff, n_cb, tcout)
                 .transpose(2, 0, 1, 3).astype(jnp.bfloat16))
        k_eff, hp, wp = k, h + 2 * pad, w + 2 * pad

    x_block = (1, hp, wp, cin_eff)
    x_block_bytes = hp * wp * cin_eff * 2
    y_block_bytes = h * w * tcout * 2
    w_bytes = n_cb * k_eff * k_eff * cin_eff * tcout * 2
    vmem1 = _vmem_limit(x_block_bytes + y_block_bytes + 2 * tcout * 4,
                        resident_bytes=2 * w_bytes
                        + h * w * tcout * 4 + h * w * cin_eff * 2)
    flops1 = 2 * m * (k_eff * k_eff * cin_eff) * cout_p
    bytes1 = n * x_block_bytes + w_bytes + m * cout_p * 2 + 2 * n * cout_p * 4

    y2d, b_sum, b_sq = pl.pallas_call(
        functools.partial(_conv_stats_kernel, ksize=k_eff, h=h, w=w),
        out_shape=(jax.ShapeDtypeStruct((m, cout_p), jnp.bfloat16),
                   jax.ShapeDtypeStruct((n, 1, cout_p), jnp.float32),
                   jax.ShapeDtypeStruct((n, 1, cout_p), jnp.float32)),
        grid_spec=pltpu.PrefetchScalarGridSpec(
            num_scalar_prefetch=0,
            grid=(n, n_cb),                      # batch outer, cout-block inner
            in_specs=[
                pl.BlockSpec(x_block, lambda b, j: (b, 0, 0, 0)),
                pl.BlockSpec(w_res.shape, lambda b, j: (0, 0, 0, 0)),
            ],
            out_specs=[
                pl.BlockSpec((h * w, tcout), lambda b, j: (b, j)),
                pl.BlockSpec((1, 1, tcout), lambda b, j: (b, 0, j)),
                pl.BlockSpec((1, 1, tcout), lambda b, j: (b, 0, j)),
            ],
        ),
        compiler_params=pltpu.CompilerParams(
            dimension_semantics=("parallel", "arbitrary"),
            vmem_limit_bytes=vmem1),
        cost_estimate=pl.CostEstimate(flops=flops1, transcendentals=0,
                                      bytes_accessed=bytes1),
    )(x_in, w_res)

    # ---- fold training-mode BN into per-channel scale / shift (tiny XLA) -----
    cnt = jnp.float32(m)
    mean = jnp.sum(b_sum[:, 0, :], axis=0) / cnt
    # NOTE: E[y^2]-E[y]^2 can cancel when |mean| >> std; clamped at 0.  Fine for
    # BN-scale conv activations (Welford would be safer for very large m).
    var = jnp.maximum(jnp.sum(b_sq[:, 0, :], axis=0) / cnt - mean * mean, 0.0)
    gamma_p = jnp.pad(gamma.astype(jnp.float32), (0, cout_p - cout),
                      constant_values=1.0)
    beta_p = jnp.pad(beta.astype(jnp.float32), (0, cout_p - cout))
    rstd = lax.rsqrt(var + eps)
    scale = (gamma_p * rstd).reshape(1, cout_p)
    shift = (beta_p - mean * gamma_p * rstd).reshape(1, cout_p)

    # ---- pass 2: y*scale + shift (+ReLU); bf16 in, x.dtype out ---------------
    out_itemsize = jnp.dtype(x_nhwc.dtype).itemsize
    tm = _choose_rows(m, cout_p * (2 + out_itemsize))
    vmem2 = _vmem_limit(tm * cout_p * (2 + out_itemsize) + 2 * cout_p * 4)
    bytes2 = m * cout_p * (2 + out_itemsize) + 2 * cout_p * 4
    out2d = pl.pallas_call(
        functools.partial(_bn_apply_kernel, apply_relu=(act == "relu")),
        out_shape=jax.ShapeDtypeStruct((m, cout_p), x_nhwc.dtype),
        grid_spec=pltpu.PrefetchScalarGridSpec(
            num_scalar_prefetch=0,
            grid=(pl.cdiv(m, tm),),
            in_specs=[
                pl.BlockSpec((tm, cout_p), lambda i: (i, 0)),
                pl.BlockSpec((1, cout_p), lambda i: (0, 0)),
                pl.BlockSpec((1, cout_p), lambda i: (0, 0)),
            ],
            out_specs=pl.BlockSpec((tm, cout_p), lambda i: (i, 0)),
        ),
        compiler_params=pltpu.CompilerParams(
            dimension_semantics=("parallel",),
            vmem_limit_bytes=vmem2),
        cost_estimate=pl.CostEstimate(flops=2 * m * cout_p, transcendentals=0,
                                      bytes_accessed=bytes2),
    )(y2d, scale, shift)

    return out2d.reshape(n, h, w, cout_p)[..., :cout]


def conv_bn_layer(x_nchw, weight_oihw, gamma, beta, **kw):
    """NCHW adapter matching the PyTorch ConvBNLayer forward (training-mode BN).

    TODO(synk): a full ResNet should keep activations NHWC end-to-end; these
    per-layer transposes are HBM round trips only at the module boundary.
    """
    x_nhwc = jnp.transpose(x_nchw, (0, 2, 3, 1))
    out_nhwc = conv_bn_layer_nhwc(x_nhwc, weight_oihw, gamma, beta, **kw)
    return jnp.transpose(out_nhwc, (0, 3, 1, 2))


def _reference(x_nchw, weight, gamma, beta, *, act="relu", eps=1e-5):
    """Pure-JAX reference: bf16-operand / f32-accumulate conv -> train BN -> ReLU."""
    k = weight.shape[-1]
    p = (k - 1) // 2
    y = lax.conv_general_dilated(
        x_nchw.astype(jnp.bfloat16), weight.astype(jnp.bfloat16),
        window_strides=(1, 1), padding=((p, p), (p, p)),
        dimension_numbers=("NCHW", "OIHW", "NCHW"),
        preferred_element_type=jnp.float32)
    mean = jnp.mean(y, axis=(0, 2, 3), keepdims=True)
    var = jnp.mean((y - mean) ** 2, axis=(0, 2, 3), keepdims=True)
    out = (y - mean) * lax.rsqrt(var + eps) * gamma.reshape(1, -1, 1, 1) \
          + beta.reshape(1, -1, 1, 1)
    if act == "relu":
        out = jnp.maximum(out, 0.0)
    return out


if __name__ == "__main__":
    key = jax.random.PRNGKey(0)

    # (name, N, Cin, H, W, Cout): a stem-like small-Cin layer (tap-packed path)
    # and a mid-network layer (per-tap path, multiple cout blocks).
    configs = [("stem", 2, 4, 16, 16, 8),
               ("block", 2, 128, 16, 16, 384)]
    K = 3
    for idx, (name, n, cin, hh, ww, cout) in enumerate(configs):
        kx, kw_, kg, kb = jax.random.split(jax.random.fold_in(key, idx), 4)
        x = jax.random.normal(kx, (n, cin, hh, ww), jnp.float32)
        # ResNet-style init scale: n = K*K*Cout.
        weight = jax.random.normal(kw_, (cout, cin, K, K), jnp.float32) * \
            math.sqrt(2.0 / (K * K * cout))
        gamma = 1.0 + 0.1 * jax.random.normal(kg, (cout,), jnp.float32)
        beta = 0.1 * jax.random.normal(kb, (cout,), jnp.float32)

        out = jax.block_until_ready(conv_bn_layer(x, weight, gamma, beta))
        assert out.shape == (n, cout, hh, ww)

        ref = _reference(x, weight, gamma, beta)
        # Tolerance covers the intentional bf16 rounding of the conv
        # intermediate between pass 1 and pass 2.
        err = float(jnp.max(jnp.abs(out - ref)))
        assert jnp.allclose(out, ref, atol=3e-2, rtol=3e-2), (name, err)

    print("KERNEL_OK")
</pallas_src>

<mosaic_0001>
module attributes {stable_mosaic.version = 11 : i64} {
  func.func @_conv_stats_kernel(%arg0: i32, %arg1: i32, %arg2: memref<1x16x16x128xbf16, #tpu.memory_space<vmem>>, %arg3: memref<1x1x128x128xbf16, #tpu.memory_space<vmem>>, %arg4: memref<256x128xbf16, #tpu.memory_space<vmem>>, %arg5: memref<1x1x128xf32, #tpu.memory_space<vmem>>, %arg6: memref<1x1x128xf32, #tpu.memory_space<vmem>>) attributes {dimension_semantics = [#tpu.dimension_semantics<parallel>, #tpu.dimension_semantics<arbitrary>], iteration_bounds = array<i64: 2, 1>, scalar_prefetch = 0 : i64, scratch_operands = 0 : i64, tpu.core_type = #tpu.core_type<tc>, window_params = [{transform_indices = @transform_0, window_bounds = array<i64: 1, 16, 16, 128>}, {pipeline_mode = #tpu.pipeline_mode<synchronous>, transform_indices = @transform_1, window_bounds = array<i64: 1, 1, 128, 128>}, {transform_indices = @transform_2, window_bounds = array<i64: 256, 128>}, {transform_indices = @transform_3, window_bounds = array<i64: 1, 1, 128>}, {transform_indices = @transform_4, window_bounds = array<i64: 1, 1, 128>}]} {
    %c0 = arith.constant 0 : index
    %c0_0 = arith.constant 0 : index
    %c0_1 = arith.constant 0 : index
    %c0_2 = arith.constant 0 : index
    %0 = vector.load %arg2[%c0, %c0_0, %c0_1, %c0_2] : memref<1x16x16x128xbf16, #tpu.memory_space<vmem>>, vector<1x16x16x128xbf16>
    %1 = vector.shape_cast %0 : vector<1x16x16x128xbf16> to vector<16x16x128xbf16>
    %2 = vector.shape_cast %1 : vector<16x16x128xbf16> to vector<256x128xbf16>
    %3 = arith.index_cast %arg1 : i32 to index
    %c0_3 = arith.constant 0 : index
    %c0_4 = arith.constant 0 : index
    %c0_5 = arith.constant 0 : index
    %4 = vector.load %arg3[%3, %c0_3, %c0_4, %c0_5] : memref<1x1x128x128xbf16, #tpu.memory_space<vmem>>, vector<1x1x128x128xbf16>
    %5 = vector.shape_cast %4 : vector<1x1x128x128xbf16> to vector<128x128xbf16>
    %cst = arith.constant dense<0.000000e+00> : vector<256x128xf32>
    %6 = tpu.matmul %2, %5, %cst {dimension_numbers = #tpu.dot_dimension_numbers<[1], [0], [0], [1], [0, 0, 1, 1], [], []>} : vector<256x128xbf16>, vector<128x128xbf16>, vector<256x128xf32> -> vector<256x128xf32>
    %7 = arith.truncf %6 : vector<256x128xf32> to vector<256x128xbf16>
    %c0_6 = arith.constant 0 : index
    %c0_7 = arith.constant 0 : index
    %8 = vector.load %arg4[%c0_6, %c0_7] : memref<256x128xbf16, #tpu.memory_space<vmem>>, vector<256x128xbf16>
    tpu.vector_store %arg4[%c0_6, %c0_7], %7 {strides = array<i32>} : memref<256x128xbf16, #tpu.memory_space<vmem>>, vector<256x128xbf16>,
    %cst_8 = arith.constant dense<0.000000e+00> : vector<128xf32>
    %9 = vector.multi_reduction <add>, %6, %cst_8 [0] : vector<256x128xf32> to vector<128xf32>
    %10 = vector.shape_cast %9 : vector<128xf32> to vector<1x128xf32>
    %c0_9 = arith.constant 0 : index
    %c0_10 = arith.constant 0 : index
    %c0_11 = arith.constant 0 : index
    %11 = vector.load %arg5[%c0_9, %c0_10, %c0_11] : memref<1x1x128xf32, #tpu.memory_space<vmem>>, vector<1x1x128xf32>
    %12 = vector.shape_cast %11 : vector<1x1x128xf32> to vector<1x128xf32>
    %13 = vector.shape_cast %10 : vector<1x128xf32> to vector<1x1x128xf32>
    tpu.vector_store %arg5[%c0_9, %c0_10, %c0_11], %13 {strides = array<i32>} : memref<1x1x128xf32, #tpu.memory_space<vmem>>, vector<1x1x128xf32>,
    %14 = arith.mulf %6, %6 : vector<256x128xf32>
    %cst_12 = arith.constant dense<0.000000e+00> : vector<128xf32>
    %15 = vector.multi_reduction <add>, %14, %cst_12 [0] : vector<256x128xf32> to vector<128xf32>
    %16 = vector.shape_cast %15 : vector<128xf32> to vector<1x128xf32>
    %c0_13 = arith.constant 0 : index
    %c0_14 = arith.constant 0 : index
    %c0_15 = arith.constant 0 : index
    %17 = vector.load %arg6[%c0_13, %c0_14, %c0_15] : memref<1x1x128xf32, #tpu.memory_space<vmem>>, vector<1x1x128xf32>
    %18 = vector.shape_cast %17 : vector<1x1x128xf32> to vector<1x128xf32>
    %19 = vector.shape_cast %16 : vector<1x128xf32> to vector<1x1x128xf32>
    tpu.vector_store %arg6[%c0_13, %c0_14, %c0_15], %19 {strides = array<i32>} : memref<1x1x128xf32, #tpu.memory_space<vmem>>, vector<1x1x128xf32>,
    return
  }
  func.func @transform_0(%arg0: i32, %arg1: i32) -> (i32, i32, i32, i32) {
    %c0_i32 = arith.constant 0 : i32
    %c0_i32_0 = arith.constant 0 : i32
    %c0_i32_1 = arith.constant 0 : i32
    %c0_i32_2 = arith.constant 0 : i32
    return %arg0, %c0_i32, %c0_i32_0, %c0_i32_1 : i32, i32, i32, i32
  }
  func.func @transform_1(%arg0: i32, %arg1: i32) -> (i32, i32, i32, i32) {
    %c0_i32 = arith.constant 0 : i32
    %c0_i32_0 = arith.constant 0 : i32
    %c0_i32_1 = arith.constant 0 : i32
    %c0_i32_2 = arith.constant 0 : i32
    %c0_i32_3 = arith.constant 0 : i32
    return %c0_i32, %c0_i32_0, %c0_i32_1, %c0_i32_2 : i32, i32, i32, i32
  }
  func.func @transform_2(%arg0: i32, %arg1: i32) -> (i32, i32) {
    %c0_i32 = arith.constant 0 : i32
    return %arg0, %arg1 : i32, i32
  }
  func.func @transform_3(%arg0: i32, %arg1: i32) -> (i32, i32, i32) {
    %c0_i32 = arith.constant 0 : i32
    %c0_i32_0 = arith.constant 0 : i32
    return %arg0, %c0_i32, %arg1 : i32, i32, i32
  }
  func.func @transform_4(%arg0: i32, %arg1: i32) -> (i32, i32, i32) {
    %c0_i32 = arith.constant 0 : i32
    %c0_i32_0 = arith.constant 0 : i32
    return %arg0, %c0_i32, %arg1 : i32, i32, i32
  }
}

</mosaic_0001>

<bundles_post_ra>
// kernel: tpu_custom_call.1
= control target key start
LH: loop header
LB: loop body
LE: loop exit
PB: predicated region body
PF: predicated region fallthrough
CT: control target
= control target key end

     0   :  { %10 = vsyncpa [#allocation3], 0  ;;  %s2165_s0 = inlined_call_operand.hbm [shape: bf16[2,16,16,128], index: 0, kind: input, shape index: {}]   ;;  %s2166_s1 = inlined_call_operand.hbm [shape: bf16[1,1,128,128], index: 1, kind: input, shape index: {}]   ;;  %s2167_s2 = inlined_call_operand.hbm [shape: bf16[512,128], index: 2, kind: output, shape index: {0}]   ;;  %s2168_s3 = inlined_call_operand.hbm [shape: f32[2,1,128], index: 3, kind: output, shape index: {1}]   ;;  %s2169_s4 = inlined_call_operand.hbm [shape: f32[2,1,128], index: 4, kind: output, shape index: {2}]  }
   0x1   :  { %12 = vsyncpa [#allocation3 + $0x1], 0 }
   0x2   :  { %13 = vsyncpa [#allocation6], 0 }
   0x3   :  { %14 = vsyncpa [#allocation4], 0 }
   0x4   :  { %16 = vsyncpa [#allocation4 + $0x1], 0 }
   0x5   :  { %17 = vsyncpa [#allocation9], 0 }
   0x6   :  { %19 = vsyncpa [#allocation9 + $0x1], 0  ;;  %s1735_s15 = smov 0   ;;  %s1737_s16 = smov 0  }
   0x7   :  { %s1739_s17 = smov 0   ;;  %s1741_s18 = smov 0  }
   0x8   :  { %s1743_s19 = smov 0   ;;  %s1745_s20 = smov 0  }
   0x9 LB: > { %s1766_s21 = sadd.s32 4294967295, %s1699_s20   ;;  %s2173_s22 = sadd.s32 4294967294, %s1699_s20   ;;  %s1699_s20 = sphi %s1745_s20, %s25_s20   ;;  %s1695_s19 = sphi %s1743_s19, %s2193_s19   ;;  %s1691_s18 = sphi %s1741_s18, %s2192_s18   ;;  %s1687_s17 = sphi %s1739_s17, %s2191_s17   ;;  %s1683_s16 = sphi %s1737_s16, %s2190_s16   ;;  %s1679_s15 = sphi %s1735_s15, %s2189_s15  }
   0xa   : > { %p57_p0 = scmp.ne.s32.totalorder %s1683_s16, %s1679_s15  ;;  %p2170_p1 = scmp.eq.s32.totalorder %s1766_s21, 0 }
   0xb   : > { %p110_p3 = scmp.eq.s32.totalorder %s2173_s22, 1  ;;  %p1094_p5 = scmp.ge.s32.totalorder %s1699_s20, 1 }
   0xc   : > { %p1777_p4 = por %p2170_p1, %p57_p0  ;;  %p173_p7 = scmp.lt.s32.totalorder %s1699_s20, 3 }
   0xd   : > { %p1782_p6 = por %p110_p3, %p57_p0  ;;  %s1701_s26 = smov [#allocation5]  }
   0xe   : > { %s2174_s23 = scalar_select %p1777_p4, 1, 0 }
   0xf   : > { %s2175_s24 = scalar_select %p1782_p6, 1, 0 }
  0x10   : > { %p1787_p8 = pnand %p1094_p5, %p173_p7  ;;  %s185_s27 = sshll.u32 %s1701_s26, 4  ;;  %s186_s27 = int_to_ptr.vmem [resolvable:$true] %s185_s27 }
  0x11   : > { %s37_s29 = sadd.s32 1, %s1695_s19  ;;  %s1495_s6 = scalar_lea.hbm %s2166_s1, 1024 }
  0x12   : > { %s2176_s25 = scalar_select %p1787_p8, 1, 0 }
  0x13   : > { %p1396_p9 = pneg %p1787_p8  ;;  %p1496_p12 = scmp.ne.s32.totalorder %s2166_s1, %s1495_s6 }
  0x14   : > { %p1502_p5 = scmp.lt.u32.totalorder %s1495_s6, %s2166_s1 }
  0x15   : > { %p1796_p11 = pnand %p1396_p9, %p2170_p1 }
  0x17   : > { %p1497_p13 = pneg %p1796_p11 }
  0x19   : > { %p1498_p0 = pnand %p1497_p13, %p1496_p12 }
  0x1b   : > { %p1499_p3 = pneg %p1498_p0 }
  0x1d   : > { %p1504_p7 = pnand %p1502_p5, %p1499_p3 }
  0x1f   : > { %1507 = shalt.err (!%p1504_p7)
}
  0x20   : > { %s1508_s11 = scalar_lea.vmem %s186_s27, 1024  ;;  %p1516_p2 = scmp.lt.s32.totalorder %s186_s27, %s186_s27 }
  0x21   : > { %p1509_p9 = scmp.ne.s32.totalorder %s186_s27, %s1508_s11  ;;  %p1517_p6 = scmp.lt.s32.totalorder %s1508_s11, %s1508_s11 }
  0x23   : > { %p1511_p10 = pnand %p1509_p9, %p1497_p13  ;;  %p1518_p4 = por %p1517_p6, %p1516_p2 }
  0x25   : > { %p1512_p1 = pneg %p1511_p10 }
  0x27   : > { %p1519_p8 = pnand %p1518_p4, %p1512_p1 }
  0x29   : > { %1522 = shalt.err (!%p1519_p8)
}
  0x2a   : > { %s1702_s12 = smov 64   ;;  %s1703_s13 = smov 4  }
  0x2b   : > { %1399 = dma.hbm_to_vmem [thread:$0]  (!%p1796_p11), %s2166_s1, 1024, %s186_s27, [#allocation6], %s1702_s12, %s1702_s12, %s1703_s13  }
  0x2c   : > { %p39_p1 = scmp.ge.s32.totalorder %s37_s29, 2  ;;  %s44_s30 = sadd.s32 1, %s1687_s17 }
  0x2d   : > { %p51_p2 = scmp.ne.s32.totalorder %s1687_s17, %s1683_s16  ;;  %p52_p4 = scmp.eq.s32.totalorder %s1699_s20, 0 }
  0x2e   : > { %s2195_s29 = smov (%p39_p1, %s37_s29), 0  ;;  %p2179_p8 = scmp.eq.s32.totalorder %s1766_s21, 1 }
  0x2f   : > { %p1826_p6 = por %p52_p4, %p51_p2  ;;  %s41_s6 = ssub.s32 %s1695_s19, %s2195_s29 }
  0x30   : > { %p1832_p10 = por %p2179_p8, %p51_p2  ;;  %p1415_p12 = scmp.lt.s32.totalorder %s1699_s20, 2 }
  0x31   : > { %p42_p11 = scmp.eq.s32.totalorder %s41_s6, 0  ;;  %s199_s27 = sand.u32 1, %s1687_s17  }
  0x32   : > { %s1097_s7 = sshll.u32 %s199_s27, 7  ;;  %s1167_s9 = sshll.u32 %s1695_s19, 11 }
  0x33   : > { %s1841_s8 = scalar_select %p42_p11, %s1687_s17, %s44_s30  }
  0x34   : > { %s1847_s14 = scalar_lea.hbm %s2165_s0, %s1167_s9  ;;  %s203_s26 = scalar_lea.vmem [#allocation2], %s1097_s7 }
  0x35   : > { %s210_s22 = sshll.u32 %s203_s26, 4  ;;  %p1853_p13 = pnand %p1415_p12, %p1826_p6  ;;  %s1849_s22 = int_to_ptr.vmem [resolvable:$true] %s210_s22 }
  0x36   : > { %s1857_s30 = scalar_lea.sflag [#allocation3], %s199_s27  ;;  %s1523_s10 = scalar_lea.hbm %s1847_s14, 2048 }
  0x37   : > { %p1524_p0 = scmp.ne.s32.totalorder %s1847_s14, %s1523_s10  ;;  %p1525_p3 = pneg %p1853_p13 }
  0x38   : > { %s1528_s5 = scalar_lea.hbm %s2165_s0, 4096  ;;  %p1529_p9 = scmp.lt.u32.totalorder %s1847_s14, %s2165_s0 }
  0x39   : > { %p1526_p5 = pnand %p1525_p3, %p1524_p0  ;;  %p1530_p1 = scmp.lt.u32.totalorder %s1528_s5, %s1523_s10 }
  0x3a   : > { %p1532_p4 = scmp.lt.u32.totalorder %s1523_s10, %s1847_s14 }
  0x3b   : > { %p1527_p7 = pneg %p1526_p5  ;;  %p1531_p2 = por %p1530_p1, %p1529_p9 }
  0x3d   : > { %p1533_p6 = por %p1532_p4, %p1531_p2 }
  0x3f   : > { %p1534_p8 = pnand %p1533_p6, %p1527_p7 }
  0x41   : > { %1537 = shalt.err (!%p1534_p8)
}
  0x42   : > { %s1538_s27 = scalar_lea.vmem %s1849_s22, 2048  ;;  %s1704_s7 = smov [#allocation2]  }
  0x43   : > { %p1539_p12 = scmp.ne.s32.totalorder %s1849_s22, %s1538_s27  ;;  %s1543_s9 = sshll.u32 %s1704_s7, 4  ;;  %s1544_s9 = int_to_ptr.vmem [resolvable:$false] %s1543_s9 }
  0x44   : > { %s1545_s11 = scalar_lea.vmem %s1544_s9, 4096  ;;  %p1546_p5 = scmp.lt.s32.totalorder %s1849_s22, %s1544_s9 }
  0x45   : > { %p1541_p11 = pnand %p1539_p12, %p1525_p3  ;;  %p1547_p9 = scmp.lt.s32.totalorder %s1545_s11, %s1538_s27 }
  0x47   : > { %p1542_p0 = pneg %p1541_p11  ;;  %p1548_p1 = por %p1547_p9, %p1546_p5 }
  0x49   : > { %p1549_p2 = pnand %p1548_p1, %p1542_p0 }
  0x4b   : > { %1552 = shalt.err (!%p1549_p2)
}
  0x4c   : > { %1403 = dma.hbm_to_vmem [thread:$0]  (!%p1853_p13), %s1847_s14, 2048, %s1849_s22, %s1857_s30, %s1702_s12, %s1702_s12, %s1703_s13  }
  0x4d   : > { %p2182_p3 = scmp.ne.s32.totalorder %s2176_s25, 0 }
  0x4e   : > { %s1891_s10 = sand.u32 (!%p2182_p3), 1, %s1683_s16   ;;  %p2183_p7 = scmp.ne.s32.totalorder (!%p2182_p3), %s2174_s23, 0 }
  0x4f   : > { %222 = sbr.rel (%p2182_p3) target bundleno = 459 (0x1cb), region = 28  ;;  %s1101_s5 = sshll.u32 (!%p2182_p3), %s1891_s10, 7 }
  0x50   : > { %s225_s26 = scalar_lea.sflag (!%p2182_p3), [#allocation3], %s1891_s10  ;;  %s1897_s6 = scalar_lea.vmem (!%p2182_p3), [#allocation2], %s1101_s5 }
  0x56   : > { %1662 = dma.done.wait (%p2183_p7), %s225_s26, 2048  }
  0x57   : > { %1664 = vsyncadd (%p2183_p7), %s225_s26, 4294965248  ;;  %p2184_p13 = scmp.eq.s32.totalorder %s1766_s21, 0 }
  0x59   : > { %1666 = dma.done.wait (%p2184_p13), [#allocation6], 1024   ;;  %p2185_p4 = pmov %p2184_p13 }
  0x5a   : > { %v1471_v0 = vld [vmem:[#allocation5] sm:$0xff]   ;;  %v1472_v1 = vld [vmem:[#allocation5 + $0x8] sm:$0xff]   ;;  %v1473_v2 = vld [vmem:[#allocation5 + $0x10] sm:$0xff]   ;;  %s1937_s22 = scalar_lea.vmem [#allocation7], %s1101_s5  ;;  %s1200_s23 = sshll.u32 %s1691_s18, 11 }
  0x5b   : > { %1668 = vsyncadd (%p2185_p4), [#allocation6], 4294966272  ;;  %1320 = vmatprep.subr.bf16.mxu0 %v1471_v0  ;;  %1368 = vmatprep.subr.bf16.mxu1 %v1471_v0  ;;  %v1474_v3 = vld [vmem:[#allocation5 + $0x18] sm:$0xff]   ;;  %v1479_v4 = vld [vmem:[%s1897_s6] sm:$0xff]   ;;  %s914_s25 = sshll.u32 %s1937_s22, 4  ;;  %s1990_s14 = scalar_lea.hbm %s2167_s2, %s1200_s23  ;;  %s1992_s25 = int_to_ptr.vmem [resolvable:$true] %s914_s25 }
  0x5c   : > { %1321 = vmatpush3.bf16.msra.mxu0 %v1471_v0  ;;  %1376 = vmatpush3.bf16.msra.mxu1 %v1471_v0  ;;  %v1475_v5 = vld [vmem:[#allocation5 + $0x20] sm:$0xff]   ;;  %v1476_v6 = vld [vmem:[#allocation5 + $0x28] sm:$0xff]   ;;  %v1477_v8 = vld [vmem:[#allocation5 + $0x30] sm:$0xff]   ;;  %s892_s30 = scalar_lea.sflag [#allocation4], %s1891_s10  ;;  %s1553_s27 = scalar_lea.vmem %s1992_s25, 2048 }
  0x5d   : > { %1322 = vmatprep.subr.bf16.mxu0 %v1472_v1  ;;  %1369 = vmatprep.subr.bf16.mxu1 %v1472_v1  ;;  %v1487_v7 = vld [vmem:[%s1897_s6 + $0x40] sm:$0xff]   ;;  %v1478_v9 = vld [vmem:[#allocation5 + $0x38] sm:$0xff]   ;;  %v1480_v10 = vld [vmem:[%s1897_s6 + $0x8] sm:$0xff]   ;;  %p1554_p6 = scmp.ne.s32.totalorder %s1992_s25, %s1553_s27  ;;  %s1705_s7 = smov [#allocation7]  }
  0x5e   : > { %1336 = vmatprep.mubr.bf16.mxu0 %v1479_v4  ;;  %1352 = vmatprep.mubr.bf16.mxu1 %v1487_v7  ;;  %v1488_v11 = vld [vmem:[%s1897_s6 + $0x48] sm:$0xff]   ;;  %v1481_v12 = vld [vmem:[%s1897_s6 + $0x10] sm:$0xff]   ;;  %v1482_v14 = vld [vmem:[%s1897_s6 + $0x18] sm:$0xff]   ;;  %s1557_s9 = sshll.u32 %s1705_s7, 4  ;;  %s1558_s9 = int_to_ptr.vmem [resolvable:$false] %s1557_s9 }
  0x5f   : > { %v1489_v13 = vld [vmem:[%s1897_s6 + $0x50] sm:$0xff]   ;;  %v1490_v15 = vld [vmem:[%s1897_s6 + $0x58] sm:$0xff]   ;;  %v1483_v16 = vld [vmem:[%s1897_s6 + $0x20] sm:$0xff]   ;;  %p1555_p8 = pnand %p1554_p6, %p1832_p10  ;;  %s1559_s11 = scalar_lea.vmem %s1558_s9, 4096 }
  0x60   : > { %1323 = vmatpush3.bf16.msra.mxu0 %v1472_v1  ;;  %1377 = vmatpush3.bf16.msra.mxu1 %v1472_v1  ;;  %v1491_v17 = vld [vmem:[%s1897_s6 + $0x60] sm:$0xff]   ;;  %v1484_v18 = vld [vmem:[%s1897_s6 + $0x28] sm:$0xff]   ;;  %v1485_v20 = vld [vmem:[%s1897_s6 + $0x30] sm:$0xff]   ;;  %p1560_p11 = scmp.lt.s32.totalorder %s1992_s25, %s1558_s9  ;;  %p1561_p0 = scmp.lt.s32.totalorder %s1559_s11, %s1553_s27 }
  0x61   : > { %1324 = vmatprep.subr.bf16.mxu0 %v1473_v2  ;;  %1370 = vmatprep.subr.bf16.mxu1 %v1473_v2  ;;  %v1492_v19 = vld [vmem:[%s1897_s6 + $0x68] sm:$0xff]   ;;  %v1493_v21 = vld [vmem:[%s1897_s6 + $0x70] sm:$0xff]   ;;  %v1486_v22 = vld [vmem:[%s1897_s6 + $0x38] sm:$0xff]   ;;  %p1556_p12 = pneg %p1555_p8 }
  0x62   : > { %v1494_v23 = vld [vmem:[%s1897_s6 + $0x78] sm:$0xff]   ;;  %p1562_p5 = por %p1561_p0, %p1560_p11 }
  0x64   : > { %1325 = vmatpush3.bf16.msra.mxu0 %v1473_v2  ;;  %1378 = vmatpush3.bf16.msra.mxu1 %v1473_v2  ;;  %p1563_p9 = pnand %p1562_p5, %p1556_p12 }
  0x65   : > { %1326 = vmatprep.subr.bf16.mxu0 %v1474_v3  ;;  %1371 = vmatprep.subr.bf16.mxu1 %v1474_v3 }
  0x68   : > { %1327 = vmatpush3.bf16.msra.mxu0 %v1474_v3  ;;  %1379 = vmatpush3.bf16.msra.mxu1 %v1474_v3 }
  0x69   : > { %1328 = vmatprep.subr.bf16.mxu0 %v1475_v5  ;;  %1372 = vmatprep.subr.bf16.mxu1 %v1475_v5 }
  0x6c   : > { %1329 = vmatpush3.bf16.msra.mxu0 %v1475_v5  ;;  %1380 = vmatpush3.bf16.msra.mxu1 %v1475_v5 }
  0x6d   : > { %1330 = vmatprep.subr.bf16.mxu0 %v1476_v6  ;;  %1373 = vmatprep.subr.bf16.mxu1 %v1476_v6 }
  0x70   : > { %1331 = vmatpush3.bf16.msra.mxu0 %v1476_v6  ;;  %1381 = vmatpush3.bf16.msra.mxu1 %v1476_v6 }
  0x71   : > { %1332 = vmatprep.subr.bf16.mxu0 %v1477_v8  ;;  %1374 = vmatprep.subr.bf16.mxu1 %v1477_v8 }
  0x74   : > { %1333 = vmatpush3.bf16.msra.mxu0 %v1477_v8  ;;  %1382 = vmatpush3.bf16.msra.mxu1 %v1477_v8 }
  0x75   : > { %1334 = vmatprep.subr.bf16.mxu0 %v1478_v9  ;;  %1375 = vmatprep.subr.bf16.mxu1 %v1478_v9 }
  0x78   : > { %1335 = vmatpush3.bf16.msra.mxu0 %v1478_v9  ;;  %1383 = vmatpush3.bf16.msra.mxu1 %v1478_v9 }
  0x7b   : > { %1337 = vmatmul.mubr.bf16.vlgmr.msra.gmra.mrb[0].mxu0 %v1480_v10  ;;  %1353 = vmatmul.mubr.bf16.vlgmr.msra.gmra.mrb[0].mxu1 %v1488_v11 }
  0x7c   : > { %1340 = vmatprep.mubr.bf16.mxu0 %v1481_v12  ;;  %1356 = vmatprep.mubr.bf16.mxu1 %v1489_v13 }
  0x83   : > { %1341 = vmatmul.mubr.bf16.gmra.mrb[4].mxu0 %v1482_v14  ;;  %1357 = vmatmul.mubr.bf16.gmra.mrb[4].mxu1 %v1490_v15 }
  0x84   : > { %1344 = vmatprep.mubr.bf16.mxu0 %v1483_v16  ;;  %1360 = vmatprep.mubr.bf16.mxu1 %v1491_v17 }
  0x8b   : > { %1345 = vmatmul.mubr.bf16.gmra.mrb[8].mxu0 %v1484_v18  ;;  %1361 = vmatmul.mubr.bf16.gmra.mrb[8].mxu1 %v1492_v19 }
  0x8c   : > { %1348 = vmatprep.mubr.bf16.mxu0 %v1485_v20  ;;  %1364 = vmatprep.mubr.bf16.mxu1 %v1493_v21 }
  0x93   : > { %1349 = vmatmul.mubr.bf16.gmra.mrb[12].mxu0 %v1486_v22  ;;  %1365 = vmatmul.mubr.bf16.gmra.mrb[12].mxu1 %v1494_v23 }
 0x14e   : > { %v1338_v24 = vpop.f32.mrb[0].mxu0  ;;  %v1923_v25 = vpop.f32.mrb[0].mxu1 }
 0x14f   : > { %v496_v26 = vpop.f32.mrb[1].mxu0  ;;  %v1925_v27 = vpop.f32.mrb[1].mxu1  ;;  %v823_v39 = vmul.f32 %v1338_v24, %v1338_v24 }
 0x150   : > { %v1339_v28 = vpop.f32.mrb[2].mxu0  ;;  %v1927_v29 = vpop.f32.mrb[2].mxu1  ;;  %v821_v30 = vmul.f32 %v496_v26, %v496_v26 }
 0x151   : > { %v1209_v31 = vpack.c.bf16 %v1339_v28, %v1338_v24  ;;  %v499_v32 = vpop.f32.mrb[3].mxu0  ;;  %v1249_v33 = vpack.c.bf16 %v1927_v29, %v1923_v25  ;;  %v1931_v34 = vpop.f32.mrb[3].mxu1  ;;  %v824_v42 = vmul.f32 %v1339_v28, %v1339_v28 }
 0x152   : > { %v1204_v35 = vpack.c.bf16 %v499_v32, %v496_v26  ;;  %v783_v36 = vadd.f32 %v499_v32, %v496_v26  ;;  %v822_v37 = vmul.f32 %v499_v32, %v499_v32  ;;  %v1244_v38 = vpack.c.bf16 %v1931_v34, %v1925_v27 }
 0x153   : > { %1281 = vst [vmem:[%s1937_s22 + $0x8] sm:$0xff] %v1209_v31   ;;  %1289 = vst [vmem:[%s1937_s22 + $0x48] sm:$0xff] %v1249_v33  }
 0x154   : > { %1205 = vst [vmem:[%s1937_s22] sm:$0xff] %v1204_v35   ;;  %v784_v40 = vadd.f32 %v1338_v24, %v783_v36  ;;  %v853_v41 = vadd.f32 %v822_v37, %v821_v30  ;;  %1288 = vst [vmem:[%s1937_s22 + $0x40] sm:$0xff] %v1244_v38  }
 0x156   : > { %v854_v43 = vadd.f32 %v853_v41, %v823_v39  ;;  %v1342_v44 = vpop.f32.mrb[4].mxu0  ;;  %v785_v45 = vadd.f32 %v1339_v28, %v784_v40  ;;  %v1943_v46 = vpop.f32.mrb[4].mxu1 }
 0x157   : > { %v512_v47 = vpop.f32.mrb[5].mxu0  ;;  %v1945_v48 = vpop.f32.mrb[5].mxu1  ;;  %v827_v63 = vmul.f32 %v1342_v44, %v1342_v44 }
 0x158   : > { %v786_v49 = vadd.f32 %v785_v45, %v512_v47  ;;  %v825_v50 = vmul.f32 %v512_v47, %v512_v47  ;;  %v855_v51 = vadd.f32 %v854_v43, %v824_v42  ;;  %v1343_v52 = vpop.f32.mrb[6].mxu0  ;;  %v1947_v53 = vpop.f32.mrb[6].mxu1 }
 0x159   : > { %v1219_v54 = vpack.c.bf16 %v1343_v52, %v1342_v44  ;;  %v515_v55 = vpop.f32.mrb[7].mxu0  ;;  %v1259_v56 = vpack.c.bf16 %v1947_v53, %v1943_v46  ;;  %v1951_v57 = vpop.f32.mrb[7].mxu1  ;;  %v828_v2 = vmul.f32 %v1343_v52, %v1343_v52 }
 0x15a   : > { %v856_v58 = vadd.f32 %v855_v51, %v825_v50  ;;  %v1214_v59 = vpack.c.bf16 %v515_v55, %v512_v47  ;;  %v787_v60 = vadd.f32 %v786_v49, %v515_v55  ;;  %v826_v61 = vmul.f32 %v515_v55, %v515_v55 }
 0x15b   : > { %1283 = vst [vmem:[%s1937_s22 + $0x18] sm:$0xff] %v1219_v54   ;;  %1291 = vst [vmem:[%s1937_s22 + $0x58] sm:$0xff] %v1259_v56   ;;  %v1254_v62 = vpack.c.bf16 %v1951_v57, %v1945_v48 }
 0x15c   : > { %1282 = vst [vmem:[%s1937_s22 + $0x10] sm:$0xff] %v1214_v59   ;;  %v788_v0 = vadd.f32 %v1342_v44, %v787_v60  ;;  %v857_v1 = vadd.f32 %v856_v58, %v826_v61  ;;  %v837_v61 = vmul.f32 %v1925_v27, %v1925_v27 }
 0x15d   : > { %1290 = vst [vmem:[%s1937_s22 + $0x50] sm:$0xff] %v1254_v62  }
 0x15e   : > { %v858_v3 = vadd.f32 %v857_v1, %v827_v63  ;;  %v1346_v4 = vpop.f32.mrb[8].mxu0  ;;  %v789_v5 = vadd.f32 %v1343_v52, %v788_v0  ;;  %v1959_v6 = vpop.f32.mrb[8].mxu1 }
 0x15f   : > { %v528_v7 = vpop.f32.mrb[9].mxu0  ;;  %v1961_v8 = vpop.f32.mrb[9].mxu1  ;;  %v831_v23 = vmul.f32 %v1346_v4, %v1346_v4 }
 0x160   : > { %v790_v9 = vadd.f32 %v789_v5, %v528_v7  ;;  %v829_v10 = vmul.f32 %v528_v7, %v528_v7  ;;  %v859_v11 = vadd.f32 %v858_v3, %v828_v2  ;;  %v1347_v12 = vpop.f32.mrb[10].mxu0  ;;  %v1963_v13 = vpop.f32.mrb[10].mxu1 }
 0x161   : > { %v1229_v14 = vpack.c.bf16 %v1347_v12, %v1346_v4  ;;  %v531_v15 = vpop.f32.mrb[11].mxu0  ;;  %v1269_v16 = vpack.c.bf16 %v1963_v13, %v1959_v6  ;;  %v1967_v17 = vpop.f32.mrb[11].mxu1  ;;  %v832_v28 = vmul.f32 %v1347_v12, %v1347_v12 }
 0x162   : > { %v860_v18 = vadd.f32 %v859_v11, %v829_v10  ;;  %v1224_v19 = vpack.c.bf16 %v531_v15, %v528_v7  ;;  %v791_v20 = vadd.f32 %v790_v9, %v531_v15  ;;  %v830_v21 = vmul.f32 %v531_v15, %v531_v15 }
 0x163   : > { %1285 = vst [vmem:[%s1937_s22 + $0x28] sm:$0xff] %v1229_v14   ;;  %1293 = vst [vmem:[%s1937_s22 + $0x68] sm:$0xff] %v1269_v16   ;;  %v1264_v22 = vpack.c.bf16 %v1967_v17, %v1961_v8 }
 0x164   : > { %1284 = vst [vmem:[%s1937_s22 + $0x20] sm:$0xff] %v1224_v19   ;;  %v792_v24 = vadd.f32 %v1346_v4, %v791_v20  ;;  %v861_v26 = vadd.f32 %v860_v18, %v830_v21 }
 0x165   : > { %1292 = vst [vmem:[%s1937_s22 + $0x60] sm:$0xff] %v1264_v22  }
 0x166   : > { %v862_v30 = vadd.f32 %v861_v26, %v831_v23  ;;  %v1350_v31 = vpop.f32.mrb[12].mxu0  ;;  %v793_v32 = vadd.f32 %v1347_v12, %v792_v24  ;;  %v1975_v33 = vpop.f32.mrb[12].mxu1 }
 0x167   : > { %v544_v35 = vpop.f32.mrb[13].mxu0  ;;  %v1977_v36 = vpop.f32.mrb[13].mxu1  ;;  %v835_v54 = vmul.f32 %v1350_v31, %v1350_v31 }
 0x168   : > { %v794_v37 = vadd.f32 %v793_v32, %v544_v35  ;;  %v833_v38 = vmul.f32 %v544_v35, %v544_v35  ;;  %v863_v39 = vadd.f32 %v862_v30, %v832_v28  ;;  %v1351_v40 = vpop.f32.mrb[14].mxu0  ;;  %v1981_v41 = vpop.f32.mrb[14].mxu1 }
 0x169   : > { %v1239_v42 = vpack.c.bf16 %v1351_v40, %v1350_v31  ;;  %v547_v43 = vpop.f32.mrb[15].mxu0  ;;  %v1279_v44 = vpack.c.bf16 %v1981_v41, %v1975_v33  ;;  %v1985_v45 = vpop.f32.mrb[15].mxu1  ;;  %v836_v58 = vmul.f32 %v1351_v40, %v1351_v40 }
 0x16a   : > { %v864_v47 = vadd.f32 %v863_v39, %v833_v38  ;;  %v1234_v49 = vpack.c.bf16 %v547_v43, %v544_v35  ;;  %v795_v50 = vadd.f32 %v794_v37, %v547_v43  ;;  %v834_v51 = vmul.f32 %v547_v43, %v547_v43 }
 0x16b   : > { %1287 = vst [vmem:[%s1937_s22 + $0x38] sm:$0xff] %v1239_v42   ;;  %1295 = vst [vmem:[%s1937_s22 + $0x78] sm:$0xff] %v1279_v44   ;;  %v1274_v52 = vpack.c.bf16 %v1985_v45, %v1977_v36 }
 0x16c   : > { %1286 = vst [vmem:[%s1937_s22 + $0x30] sm:$0xff] %v1234_v49   ;;  %v796_v55 = vadd.f32 %v1350_v31, %v795_v50  ;;  %v865_v56 = vadd.f32 %v864_v47, %v834_v51 }
 0x16d   : > { %1294 = vst [vmem:[%s1937_s22 + $0x70] sm:$0xff] %v1274_v52  }
 0x16e   : > { %v866_v59 = vadd.f32 %v865_v56, %v835_v54  ;;  %v797_v60 = vadd.f32 %v1351_v40, %v796_v55 }
 0x16f   : > { %1566 = shalt.err (!%p1563_p9)
}
 0x170   : > { %s1567_s5 = scalar_lea.hbm %s1990_s14, 2048  ;;  %s1571_s22 = scalar_lea.hbm %s2167_s2, 4096 }
 0x171   : > { %p1568_p1 = scmp.ne.s32.totalorder %s1990_s14, %s1567_s5  ;;  %p1572_p7 = scmp.lt.u32.totalorder %s1990_s14, %s2167_s2 }
 0x172   : > { %p1573_p13 = scmp.lt.u32.totalorder %s1571_s22, %s1567_s5  ;;  %p1575_p6 = scmp.lt.u32.totalorder %s1567_s5, %s1990_s14 }
 0x173   : > { %p1569_p2 = pnand %p1568_p1, %p1832_p10 }
 0x174   : > { %p1574_p4 = por %p1573_p13, %p1572_p7 }
 0x175   : > { %p1570_p3 = pneg %p1569_p2 }
 0x176   : > { %p1576_p8 = por %p1575_p6, %p1574_p4 }
 0x178   : > { %p1577_p12 = pnand %p1576_p8, %p1570_p3 }
 0x17a   : > { %1580 = shalt.err (!%p1577_p12)
}
 0x17b   : > { %s1706_s13 = smov 64   ;;  %s1707_s27 = smov 4   ;;  %v798_v62 = vadd.f32 %v797_v60, %v1925_v27  ;;  %v867_v63 = vadd.f32 %v866_v59, %v836_v58  ;;  %v838_v2 = vmul.f32 %v1931_v34, %v1931_v34  ;;  %v839_v3 = vmul.f32 %v1923_v25, %v1923_v25 }
 0x17c   : > { %1390 = dma.vmem_to_hbm [thread:$0]  (%p1832_p10), %s1992_s25, 2048, %s1990_s14, %s892_s30, %s1706_s13, %s1706_s13, %s1707_s27   ;;  %v840_v7 = vmul.f32 %v1927_v29, %v1927_v29  ;;  %v841_v27 = vmul.f32 %v1945_v48, %v1945_v48  ;;  %v842_v15 = vmul.f32 %v1951_v57, %v1951_v57  ;;  %v846_v24 = vmul.f32 %v1967_v17, %v1967_v17 }
 0x17d   : > { %v868_v0 = vadd.f32 %v867_v63, %v837_v61  ;;  %v799_v1 = vadd.f32 %v798_v62, %v1931_v34  ;;  %v851_v38 = vmul.f32 %v1975_v33, %v1975_v33  ;;  %v852_v40 = vmul.f32 %v1981_v41, %v1981_v41  ;;  %s896_s25 = sand.u32 1, %s1766_s21   ;;  %s1163_s14 = sshll.u32 %s1691_s18, 4 }
 0x17e   : > { %s258_s30 = scalar_lea.vmem [#allocation8], %s1891_s10  ;;  %s264_s9 = scalar_lea.vmem [#allocation10], %s1891_s10 }
 0x17f   : > { %v800_v4 = vadd.f32 %v1923_v25, %v799_v1  ;;  %v869_v5 = vadd.f32 %v868_v0, %v838_v2  ;;  %v843_v25 = vmul.f32 %v1943_v46, %v1943_v46  ;;  %s931_s7 = sshll.u32 %s258_s30, 4  ;;  %s945_s11 = sshll.u32 %s264_s9, 4  ;;  %s2083_s7 = int_to_ptr.vmem [resolvable:$true] %s931_s7  ;;  %s2090_s11 = int_to_ptr.vmem [resolvable:$true] %s945_s11 }
 0x180   : > { %s2081_s6 = scalar_lea.hbm %s2168_s3, %s1163_s14  ;;  %s2088_s22 = scalar_lea.hbm %s2169_s4, %s1163_s14 }
 0x181   : > { %v870_v9 = vadd.f32 %v869_v5, %v839_v3  ;;  %v801_v10 = vadd.f32 %v1927_v29, %v800_v4  ;;  %v844_v29 = vmul.f32 %v1947_v53, %v1947_v53  ;;  %s2092_s23 = scalar_lea.sflag [#allocation9], %s896_s25  ;;  %s1581_s12 = scalar_lea.vmem %s2083_s7, 16 }
 0x182   : > { %p1582_p11 = scmp.ne.s32.totalorder %s2083_s7, %s1581_s12  ;;  %s1708_s13 = smov [#allocation8]  }
 0x183   : > { %v802_v11 = vadd.f32 %v801_v10, %v1945_v48  ;;  %v871_v12 = vadd.f32 %v870_v9, %v840_v7  ;;  %v845_v48 = vmul.f32 %v1961_v8, %v1961_v8  ;;  %s1585_s27 = sshll.u32 %s1708_s13, 4  ;;  %s1586_s27 = int_to_ptr.vmem [resolvable:$false] %s1585_s27 }
 0x184   : > { %p1583_p0 = pnand %p1582_p11, %p1832_p10  ;;  %s1587_s5 = scalar_lea.vmem %s1586_s27, 32 }
 0x185   : > { %v872_v14 = vadd.f32 %v871_v12, %v841_v27  ;;  %v803_v34 = vadd.f32 %v802_v11, %v1951_v57  ;;  %p1588_p9 = scmp.lt.s32.totalorder %s2083_s7, %s1586_s27  ;;  %p1589_p1 = scmp.lt.s32.totalorder %s1587_s5, %s1581_s12 }
 0x186   : > { %p1584_p5 = pneg %p1583_p0 }
 0x187   : > { %v804_v16 = vadd.f32 %v1943_v46, %v803_v34  ;;  %v873_v18 = vadd.f32 %v872_v14, %v842_v15  ;;  %v847_v46 = vmul.f32 %v1959_v6, %v1959_v6  ;;  %p1590_p2 = por %p1589_p1, %p1588_p9 }
 0x189   : > { %v874_v19 = vadd.f32 %v873_v18, %v843_v25  ;;  %v805_v20 = vadd.f32 %v1947_v53, %v804_v16  ;;  %v848_v53 = vmul.f32 %v1963_v13, %v1963_v13  ;;  %p1591_p3 = pnand %p1590_p2, %p1584_p5 }
 0x18b   : > { %v806_v21 = vadd.f32 %v805_v20, %v1961_v8  ;;  %v875_v22 = vadd.f32 %v874_v19, %v844_v29  ;;  %v849_v8 = vmul.f32 %v1977_v36, %v1977_v36 }
 0x18d   : > { %v876_v23 = vadd.f32 %v875_v22, %v845_v48  ;;  %v807_v57 = vadd.f32 %v806_v21, %v1967_v17 }
 0x18f   : > { %v808_v26 = vadd.f32 %v1959_v6, %v807_v57  ;;  %v877_v28 = vadd.f32 %v876_v23, %v846_v24  ;;  %v850_v6 = vmul.f32 %v1985_v45, %v1985_v45 }
 0x191   : > { %v878_v30 = vadd.f32 %v877_v28, %v847_v46  ;;  %v809_v31 = vadd.f32 %v1963_v13, %v808_v26 }
 0x193   : > { %v810_v32 = vadd.f32 %v809_v31, %v1977_v36  ;;  %v879_v35 = vadd.f32 %v878_v30, %v848_v53 }
 0x195   : > { %v880_v37 = vadd.f32 %v879_v35, %v849_v8  ;;  %v811_v17 = vadd.f32 %v810_v32, %v1985_v45 }
 0x197   : > { %v812_v13 = vadd.f32 %v1975_v33, %v811_v17  ;;  %v881_v39 = vadd.f32 %v880_v37, %v850_v6 }
 0x199   : > { %v813_v36 = vadd.f32 %v1981_v41, %v812_v13  ;;  %v882_v42 = vadd.f32 %v881_v39, %v851_v38 }
 0x19b   : > { %v814_v43 = vrot.slane %v813_v36, 4  ;;  %v883_v44 = vadd.f32 %v882_v42, %v852_v40 }
 0x19d   : > { %v815_v47 = vadd.f32 %v814_v43, %v813_v36  ;;  %v884_v45 = vrot.slane %v883_v44, 4 }
 0x19f   : > { %v816_v49 = vrot.slane %v815_v47, 2  ;;  %v885_v50 = vadd.f32 %v884_v45, %v883_v44 }
 0x1a1   : > { %v817_v51 = vadd.f32 %v816_v49, %v815_v47  ;;  %v886_v52 = vrot.slane %v885_v50, 2 }
 0x1a3   : > { %v818_v33 = vrot.slane %v817_v51, 1  ;;  %v887_v54 = vadd.f32 %v886_v52, %v885_v50 }
 0x1a5   : > { %v888_v41 = vrot.slane %v887_v54, 1  ;;  %v819_v55 = vadd.f32 %v818_v33, %v817_v51 }
 0x1a7   : > { %820 = vst [vmem:[%s258_s30] sm:$0x1] %v819_v55  ;;  %v889_v56 = vadd.f32 %v888_v41, %v887_v54 }
 0x1a8   : > { %1594 = shalt.err (!%p1591_p3)
}
 0x1a9   : > { %s1595_s25 = scalar_lea.hbm %s2081_s6, 16  ;;  %s1599_s26 = scalar_lea.hbm %s2168_s3, 32 }
 0x1aa   : > { %p1596_p7 = scmp.ne.s32.totalorder %s2081_s6, %s1595_s25  ;;  %p1600_p6 = scmp.lt.u32.totalorder %s2081_s6, %s2168_s3 }
 0x1ab   : > { %p1601_p8 = scmp.lt.u32.totalorder %s1599_s26, %s1595_s25  ;;  %p1603_p11 = scmp.lt.u32.totalorder %s1595_s25, %s2081_s6 }
 0x1ac   : > { %p1597_p13 = pnand %p1596_p7, %p1832_p10 }
 0x1ad   : > { %p1602_p12 = por %p1601_p8, %p1600_p6 }
 0x1ae   : > { %p1598_p4 = pneg %p1597_p13 }
 0x1af   : > { %p1604_p0 = por %p1603_p11, %p1602_p12 }
 0x1b1   : > { %p1605_p5 = pnand %p1604_p0, %p1598_p4 }
 0x1b3   : > { %1608 = shalt.err (!%p1605_p5)
}
 0x1b4   : > { %1391 = dma.vmem_to_hbm [thread:$0]  (%p1832_p10), %s2083_s7, 16, %s2081_s6, %s2092_s23   ;;  %890 = vst [vmem:[%s264_s9] sm:$0x1] %v889_v56 }
 0x1b5   : > { %s1609_s12 = scalar_lea.vmem %s2090_s11, 16  ;;  %s1709_s13 = smov [#allocation10]  }
 0x1b6   : > { %p1610_p9 = scmp.ne.s32.totalorder %s2090_s11, %s1609_s12  ;;  %s1613_s27 = sshll.u32 %s1709_s13, 4  ;;  %s1614_s27 = int_to_ptr.vmem [resolvable:$false] %s1613_s27 }
 0x1b7   : > { %s1615_s5 = scalar_lea.vmem %s1614_s27, 32  ;;  %p1616_p3 = scmp.lt.s32.totalorder %s2090_s11, %s1614_s27 }
 0x1b8   : > { %p1611_p1 = pnand %p1610_p9, %p1832_p10  ;;  %p1617_p7 = scmp.lt.s32.totalorder %s1615_s5, %s1609_s12 }
 0x1ba   : > { %p1612_p2 = pneg %p1611_p1  ;;  %p1618_p13 = por %p1617_p7, %p1616_p3 }
 0x1bc   : > { %p1619_p4 = pnand %p1618_p13, %p1612_p2 }
 0x1be   : > { %1622 = shalt.err (!%p1619_p4)
}
 0x1bf   : > { %s1623_s10 = scalar_lea.hbm %s2088_s22, 16  ;;  %s1627_s6 = scalar_lea.hbm %s2169_s4, 32 }
 0x1c0   : > { %p1624_p6 = scmp.ne.s32.totalorder %s2088_s22, %s1623_s10  ;;  %p1628_p11 = scmp.lt.u32.totalorder %s2088_s22, %s2169_s4 }
 0x1c1   : > { %p1629_p0 = scmp.lt.u32.totalorder %s1627_s6, %s1623_s10  ;;  %p1631_p9 = scmp.lt.u32.totalorder %s1623_s10, %s2088_s22 }
 0x1c2   : > { %p1625_p8 = pnand %p1624_p6, %p1832_p10 }
 0x1c3   : > { %p1630_p5 = por %p1629_p0, %p1628_p11 }
 0x1c4   : > { %p1626_p12 = pneg %p1625_p8 }
 0x1c5   : > { %p1632_p1 = por %p1631_p9, %p1630_p5 }
 0x1c7   : > { %p1633_p2 = pnand %p1632_p1, %p1626_p12 }
 0x1c9   : > { %1636 = shalt.err (!%p1633_p2)
}
 0x1ca   : > { %1392 = dma.vmem_to_hbm [thread:$0]  (%p1832_p10), %s2090_s11, 16, %s2088_s22, %s2092_s23  }
 0x1cb PF: > { %s957_s30 = sand.u32 1, %s1679_s15   ;;  %p2186_p3 = scmp.ne.s32.totalorder %s2175_s24, 0 }
 0x1cc   : > { %p2187_p7 = scmp.ge.s32.totalorder %s1699_s20, 2  ;;  %s958_s26 = scalar_lea.sflag [#allocation4], %s957_s30 }
 0x1ce   : > { %p1405_p13 = pnand %p2187_p7, %p2186_p3 }
 0x1d0   : > { %1670 = dma.done.wait (!%p1405_p13), %s958_s26, 2048  }
 0x1d1   : > { %1672 = vsyncadd (!%p1405_p13), %s958_s26, 4294965248  ;;  %s2188_s18 = sadd.s32 4294967294, %s1699_s20  }
 0x1d2   : > { %s966_s21 = sand.u32 1, %s2188_s18  }
 0x1d3   : > { %s967_s12 = scalar_lea.sflag [#allocation9], %s966_s21 }
 0x1d4   : > { %1674 = dma.done.wait (!%p1405_p13), %s967_s12, 32  }
 0x1d5   : > { %1676 = vsyncadd (!%p1405_p13), %s967_s12, 4294967264  ;;  %s25_s20 = sadd.s32 1, %s1699_s20   ;;  %s2189_s15 = smov %s1683_s16 }
 0x1d6   : > { %p22_p10 = scmp.ge.s32.totalorder %s25_s20, 4   ;;  %s2190_s16 = smov %s1687_s17 }
 0x1d7   : > { %s2191_s17 = smov %s1841_s8  ;;  %s2192_s18 = smov %s1695_s19 }
 0x1d8   : > { %s2193_s19 = smov %s2195_s29  ;;  %24 = sbr.rel (!%p22_p10) target bundleno = 9 (0x9), region = 110 }
 0x1df   :  { %979 = vsyncpa [#allocation3], 1 }
 0x1e0   :  { %981 = vsyncpa [#allocation3 + $0x1], 1 }
 0x1e1   :  { %982 = vsyncpa [#allocation6], 1 }
 0x1e2   :  { %983 = vsyncpa [#allocation4], 1 }
 0x1e3   :  { %985 = vsyncpa [#allocation4 + $0x1], 1 }
 0x1e4   :  { %986 = vsyncpa [#allocation9], 1 }
 0x1e5   :  { %988 = vsyncpa [#allocation9 + $0x1], 1 }

</bundles_post_ra>
